<compile_context>
chip_gen: v6e
topology: v6e:2x2x1
jax: 0.10.0
libtpu: 0.0.40
codegen_flags: <defaults>
</compile_context>

<pallas_src>
import jax
import jax.numpy as jnp
from jax.experimental import pallas as pl
from jax.experimental.pallas import tpu as pltpu

# ----------------------------- static "config" -------------------------------
# Derived exactly the way HeadBuilder.__init__ would for a small synthetic cfg:
#   CLS_ACTIVATION = 'Sigmoid', anchor_num = 1      -> pred_cls_channel = 1
#   REGRESSION_METHOD.TYPE = 'Dist-Anchor'          -> base_num = anchor_num = 1,
#                                                      channel_num = 6
#   layer_type = 'Det', bn = True, is_training = False (BN folded)
ANCHOR_NUM = 1
PRED_CLS_CHANNEL = ANCHOR_NUM          # Sigmoid activation
PRED_REG_BASE_NUM = ANCHOR_NUM         # 'Anchor' type
PRED_REG_CHANNEL_NUM = 6               # 'Dist-Anchor'
PRE_CHANNEL = 64                       # cfg...ARCHITECTURE[...][15]
MLP_LIST = [64, 64]                    # head_cfg mlp list
XYZ_INDEX = [0, 1]
FEATURE_INDEX = [0, 1]
LAYER_TYPE = 'Det'

C2 = MLP_LIST[-1]
CCLS = PRED_CLS_CHANNEL
CREG = PRED_REG_BASE_NUM * PRED_REG_CHANNEL_NUM
HEAD_W = 8                             # packed head output: [cls | reg | pad]
assert CCLS + CREG <= HEAD_W

TILE_M_MAX = 8192                      # rows (points) per grid step (sweepable)
TILE_M_MIN = 128
MIN_GRID_STEPS = 4                     # >= 2 steps per TensorCore on dual-TC v7x


# ------------------------------- Pallas kernel --------------------------------
def head_kernel(x_ref, w1_ref, b1_ref, w2_ref, b2_ref, wo_ref, bo_ref,
                feat_ref, head_ref):
    """Fused per-point MLP (Conv1d+BN+ReLU x2) + packed [cls|reg] head."""
    x = x_ref[...].astype(jnp.bfloat16)                              # f32 stream -> bf16 in-kernel
    h = jnp.dot(x, w1_ref[...], preferred_element_type=jnp.float32) + b1_ref[...]
    h = jnp.maximum(h, 0.0)                                          # ReLU (f32)
    h = jnp.dot(h.astype(w2_ref.dtype), w2_ref[...],
                preferred_element_type=jnp.float32) + b2_ref[...]
    h = jnp.maximum(h, 0.0)                                          # ReLU (f32) == feature out
    feat_ref[...] = h.astype(feat_ref.dtype)                         # direct f32 store (no identity matmul)
    head = jnp.dot(h.astype(wo_ref.dtype), wo_ref[...],
                   preferred_element_type=jnp.float32) + bo_ref[...]
    head_ref[...] = head.astype(head_ref.dtype)                      # [cls|reg|pad] f32 store


def _choose_tile(m):
    """Largest tile <= TILE_M_MAX that still leaves >= MIN_GRID_STEPS grid steps."""
    tile = TILE_M_MAX
    while tile > TILE_M_MIN and pl.cdiv(m, tile) < MIN_GRID_STEPS:
        tile //= 2
    return tile


def fused_head_mlp(feature_flat, params):
    """feature_flat: (M, Cin) channels-last f32. Returns (feat (M,64) f32, head (M,8) f32)."""
    w1, b1, w2, b2, wo, bo = params
    M, Cin = feature_flat.shape
    C1 = w1.shape[1]

    tile = _choose_tile(M)
    grid = pl.cdiv(M, tile)            # ragged last tile handled by Pallas write-masking

    row_spec = lambda c: pl.BlockSpec((tile, c), lambda i: (i, 0))
    full_spec = lambda r, c: pl.BlockSpec((r, c), lambda i: (0, 0))

    grid_spec = pltpu.PrefetchScalarGridSpec(
        num_scalar_prefetch=0,
        grid=(grid,),
        in_specs=[
            row_spec(Cin),                              # x (f32, cast in-kernel)
            full_spec(Cin, C1), full_spec(1, C1),       # layer 1 (BN folded)
            full_spec(C1, C2), full_spec(1, C2),        # layer 2 (BN folded)
            full_spec(C2, HEAD_W), full_spec(1, HEAD_W),  # packed [cls|reg] head
        ],
        out_specs=[row_spec(C2), row_spec(HEAD_W)],
    )

    feat, head = pl.pallas_call(
        head_kernel,
        out_shape=(jax.ShapeDtypeStruct((M, C2), jnp.float32),
                   jax.ShapeDtypeStruct((M, HEAD_W), jnp.float32)),
        grid_spec=grid_spec,
        compiler_params=pltpu.CompilerParams(
            dimension_semantics=("parallel",),
            # Peak footprint ~16 MiB at TILE_M=8192 (double-buffered f32 in/out
            # tiles + f32 intermediates); 48 MiB leaves headroom on every gen,
            # including v7x's 64 MiB physical VMEM.
            vmem_limit_bytes=48 * 1024 * 1024),
    )(feature_flat, w1, b1, w2, b2, wo, bo)

    return feat, head


# ------------------------------ parameter setup --------------------------------
def fold_bn(w, b, gamma, beta, mean, var, eps=1e-5):
    """Fold eval-mode BatchNorm1d into the preceding 1x1 conv (W: (Cin, Cout))."""
    scale = gamma / jnp.sqrt(var + eps)
    return w * scale[None, :], (b - mean) * scale + beta


def make_params(key):
    ks = jax.random.split(key, 16)
    cin, c1 = PRE_CHANNEL, MLP_LIST[0]

    def conv(k, ci, co, scale=0.05):
        return jax.random.normal(k, (ci, co), jnp.float32) * scale

    # layer_modules: Conv1d + BN + ReLU, x2   (BN params deterministic, folded)
    w1, b1 = conv(ks[0], cin, c1), jax.random.normal(ks[1], (c1,)) * 0.05
    g1, be1 = 1.0 + 0.1 * jax.random.normal(ks[2], (c1,)), 0.1 * jax.random.normal(ks[3], (c1,))
    m1, v1 = 0.1 * jax.random.normal(ks[4], (c1,)), 1.0 + 0.1 * jax.random.uniform(ks[5], (c1,))
    w1, b1 = fold_bn(w1, b1, g1, be1, m1, v1)

    w2, b2 = conv(ks[6], c1, C2), jax.random.normal(ks[7], (C2,)) * 0.05
    g2, be2 = 1.0 + 0.1 * jax.random.normal(ks[8], (C2,)), 0.1 * jax.random.normal(ks[9], (C2,))
    m2, v2 = 0.1 * jax.random.normal(ks[10], (C2,)), 1.0 + 0.1 * jax.random.uniform(ks[11], (C2,))
    w2, b2 = fold_bn(w2, b2, g2, be2, m2, v2)

    # BoxRegressionHead: 1x1 conv cls / reg branches (no activation).
    # TODO(synk): exact BoxRegressionHead internals (extra hidden convs,
    # attribute/velocity branches) are not available in the reference source;
    # implemented as single 1x1-conv cls & reg predictors.
    wc, bc = conv(ks[12], C2, CCLS), jax.random.normal(ks[13], (CCLS,)) * 0.05
    wr, br = conv(ks[14], C2, CREG), jax.random.normal(ks[15], (CREG,)) * 0.05

    # Pack cls + reg into one small lane-contiguous (C2, 8) matmul.
    wo = jnp.zeros((C2, HEAD_W), jnp.float32)
    wo = wo.at[:, :CCLS].set(wc)
    wo = wo.at[:, CCLS:CCLS + CREG].set(wr)
    bo = jnp.zeros((HEAD_W,), jnp.float32)
    bo = bo.at[:CCLS].set(bc)
    bo = bo.at[CCLS:CCLS + CREG].set(br)

    as_row = lambda v: v.reshape(1, -1).astype(jnp.float32)
    return (w1.astype(jnp.bfloat16), as_row(b1),
            w2.astype(jnp.bfloat16), as_row(b2),
            wo.astype(jnp.bfloat16), as_row(bo))


# --------------------------- HeadBuilder.forward ------------------------------
def head_builder_forward(xyz_list, feature_list, output_dict, params):
    # concat selected xyz / feature tensors along the point dim (dim=1)
    xyz_input = jnp.concatenate([xyz_list[i] for i in XYZ_INDEX], axis=1)          # (B, N, 3)
    feature_input = jnp.concatenate([feature_list[i] for i in FEATURE_INDEX], axis=1)  # (B, N, Cin)

    B, N, Cin = feature_input.shape
    flat = feature_input.reshape(B * N, Cin)

    feat_flat, head_flat = fused_head_mlp(flat, params)     # (M,64) f32, (M,8) f32

    feature_out = feat_flat.reshape(B, N, C2)
    pred_cls = head_flat[:, :CCLS].reshape(B, N, CCLS)
    pred_reg = head_flat[:, CCLS:CCLS + CREG].reshape(
        B, N, PRED_REG_BASE_NUM, PRED_REG_CHANNEL_NUM)

    output_dict['pred_cls'].append(pred_cls)
    output_dict['pred_reg'].append(pred_reg)
    if LAYER_TYPE == 'Det':
        output_dict['output_xyz'].append(xyz_input)
        output_dict['output_feature'].append(feature_out)
    return xyz_input, feature_out, output_dict


# ---------------------------------- main --------------------------------------
def _reference(flat, params):
    """Pure-JAX reference mirroring the kernel's bf16-matmul / f32-accum math."""
    w1, b1, w2, b2, wo, bo = params
    x = flat.astype(jnp.bfloat16)
    h = jnp.maximum(jnp.dot(x, w1, preferred_element_type=jnp.float32) + b1, 0.0)
    h = jnp.maximum(jnp.dot(h.astype(jnp.bfloat16), w2,
                            preferred_element_type=jnp.float32) + b2, 0.0)
    head = jnp.dot(h.astype(jnp.bfloat16), wo,
                   preferred_element_type=jnp.float32) + bo
    return h, head[:, :CCLS], head[:, CCLS:CCLS + CREG]


if __name__ == "__main__":
    key = jax.random.PRNGKey(0)
    k_in, k_par = jax.random.split(key)
    B, N_PER_SET = 2, 60          # B*N = 240 -> exercises the ragged-last-tile path

    kxs = jax.random.split(k_in, 4)
    xyz_list = [jax.random.normal(kxs[0], (B, N_PER_SET, 3), jnp.float32),
                jax.random.normal(kxs[1], (B, N_PER_SET, 3), jnp.float32)]
    feature_list = [jax.random.normal(kxs[2], (B, N_PER_SET, PRE_CHANNEL), jnp.float32),
                    jax.random.normal(kxs[3], (B, N_PER_SET, PRE_CHANNEL), jnp.float32)]

    params = make_params(k_par)
    output_dict = {'pred_cls': [], 'pred_reg': [], 'output_xyz': [], 'output_feature': []}

    xyz_out, feat_out, output_dict = head_builder_forward(
        xyz_list, feature_list, output_dict, params)
    jax.block_until_ready((xyz_out, feat_out,
                           output_dict['pred_cls'][0], output_dict['pred_reg'][0]))

    # correctness check vs pure-JAX reference
    flat = jnp.concatenate([feature_list[i] for i in FEATURE_INDEX],
                           axis=1).reshape(-1, PRE_CHANNEL)
    ref_feat, ref_cls, ref_reg = _reference(flat, params)
    assert jnp.allclose(feat_out.reshape(ref_feat.shape), ref_feat, atol=1e-2, rtol=1e-2)
    assert jnp.allclose(output_dict['pred_cls'][0].reshape(ref_cls.shape), ref_cls,
                        atol=1e-2, rtol=1e-2)
    assert jnp.allclose(output_dict['pred_reg'][0].reshape(ref_reg.shape), ref_reg,
                        atol=1e-2, rtol=1e-2)
    assert xyz_out.shape == (B, 2 * N_PER_SET, 3)
    assert feat_out.shape == (B, 2 * N_PER_SET, C2)

    print("KERNEL_OK")
</pallas_src>

<mosaic_0001>
module attributes {stable_mosaic.version = 11 : i64} {
  func.func @head_kernel(%arg0: i32, %arg1: memref<128x64xf32, #tpu.memory_space<vmem>>, %arg2: memref<64x64xbf16, #tpu.memory_space<vmem>>, %arg3: memref<1x64xf32, #tpu.memory_space<vmem>>, %arg4: memref<64x64xbf16, #tpu.memory_space<vmem>>, %arg5: memref<1x64xf32, #tpu.memory_space<vmem>>, %arg6: memref<64x8xbf16, #tpu.memory_space<vmem>>, %arg7: memref<1x8xf32, #tpu.memory_space<vmem>>, %arg8: memref<128x64xf32, #tpu.memory_space<vmem>>, %arg9: memref<128x8xf32, #tpu.memory_space<vmem>>) attributes {dimension_semantics = [#tpu.dimension_semantics<parallel>], iteration_bounds = array<i64: 2>, scalar_prefetch = 0 : i64, scratch_operands = 0 : i64, tpu.core_type = #tpu.core_type<tc>, window_params = [{transform_indices = @transform_0, window_bounds = array<i64: 128, 64>}, {pipeline_mode = #tpu.pipeline_mode<synchronous>, transform_indices = @transform_1, window_bounds = array<i64: 64, 64>}, {pipeline_mode = #tpu.pipeline_mode<synchronous>, transform_indices = @transform_2, window_bounds = array<i64: 1, 64>}, {pipeline_mode = #tpu.pipeline_mode<synchronous>, transform_indices = @transform_3, window_bounds = array<i64: 64, 64>}, {pipeline_mode = #tpu.pipeline_mode<synchronous>, transform_indices = @transform_4, window_bounds = array<i64: 1, 64>}, {pipeline_mode = #tpu.pipeline_mode<synchronous>, transform_indices = @transform_5, window_bounds = array<i64: 64, 8>}, {pipeline_mode = #tpu.pipeline_mode<synchronous>, transform_indices = @transform_6, window_bounds = array<i64: 1, 8>}, {transform_indices = @transform_7, window_bounds = array<i64: 128, 64>}, {transform_indices = @transform_8, window_bounds = array<i64: 128, 8>}]} {
    %c0 = arith.constant 0 : index
    %c0_0 = arith.constant 0 : index
    %0 = vector.load %arg1[%c0, %c0_0] : memref<128x64xf32, #tpu.memory_space<vmem>>, vector<128x64xf32>
    %1 = arith.truncf %0 : vector<128x64xf32> to vector<128x64xbf16>
    %c0_1 = arith.constant 0 : index
    %c0_2 = arith.constant 0 : index
    %2 = vector.load %arg2[%c0_1, %c0_2] : memref<64x64xbf16, #tpu.memory_space<vmem>>, vector<64x64xbf16>
    %cst = arith.constant dense<0.000000e+00> : vector<128x64xf32>
    %3 = tpu.matmul %1, %2, %cst {dimension_numbers = #tpu.dot_dimension_numbers<[1], [0], [0], [1], [0, 0, 1, 1], [], []>} : vector<128x64xbf16>, vector<64x64xbf16>, vector<128x64xf32> -> vector<128x64xf32>
    %c0_3 = arith.constant 0 : index
    %c0_4 = arith.constant 0 : index
    %4 = vector.load %arg3[%c0_3, %c0_4] : memref<1x64xf32, #tpu.memory_space<vmem>>, vector<1x64xf32>
    %5 = vector.broadcast %4 : vector<1x64xf32> to vector<128x64xf32>
    %6 = arith.addf %3, %5 : vector<128x64xf32>
    %cst_5 = arith.constant 0.000000e+00 : f32
    %7 = vector.broadcast %cst_5 : f32 to vector<128x64xf32>
    %8 = arith.maximumf %6, %7 : vector<128x64xf32>
    %9 = arith.truncf %8 : vector<128x64xf32> to vector<128x64xbf16>
    %c0_6 = arith.constant 0 : index
    %c0_7 = arith.constant 0 : index
    %10 = vector.load %arg4[%c0_6, %c0_7] : memref<64x64xbf16, #tpu.memory_space<vmem>>, vector<64x64xbf16>
    %cst_8 = arith.constant dense<0.000000e+00> : vector<128x64xf32>
    %11 = tpu.matmul %9, %10, %cst_8 {dimension_numbers = #tpu.dot_dimension_numbers<[1], [0], [0], [1], [0, 0, 1, 1], [], []>} : vector<128x64xbf16>, vector<64x64xbf16>, vector<128x64xf32> -> vector<128x64xf32>
    %c0_9 = arith.constant 0 : index
    %c0_10 = arith.constant 0 : index
    %12 = vector.load %arg5[%c0_9, %c0_10] : memref<1x64xf32, #tpu.memory_space<vmem>>, vector<1x64xf32>
    %13 = vector.broadcast %12 : vector<1x64xf32> to vector<128x64xf32>
    %14 = arith.addf %11, %13 : vector<128x64xf32>
    %cst_11 = arith.constant 0.000000e+00 : f32
    %15 = vector.broadcast %cst_11 : f32 to vector<128x64xf32>
    %16 = arith.maximumf %14, %15 : vector<128x64xf32>
    %c0_12 = arith.constant 0 : index
    %c0_13 = arith.constant 0 : index
    %17 = vector.load %arg8[%c0_12, %c0_13] : memref<128x64xf32, #tpu.memory_space<vmem>>, vector<128x64xf32>
    tpu.vector_store %arg8[%c0_12, %c0_13], %16 {strides = array<i32>} : memref<128x64xf32, #tpu.memory_space<vmem>>, vector<128x64xf32>,
    %18 = arith.truncf %16 : vector<128x64xf32> to vector<128x64xbf16>
    %c0_14 = arith.constant 0 : index
    %c0_15 = arith.constant 0 : index
    %19 = vector.load %arg6[%c0_14, %c0_15] : memref<64x8xbf16, #tpu.memory_space<vmem>>, vector<64x8xbf16>
    %cst_16 = arith.constant dense<0.000000e+00> : vector<128x8xf32>
    %20 = tpu.matmul %18, %19, %cst_16 {dimension_numbers = #tpu.dot_dimension_numbers<[1], [0], [0], [1], [0, 0, 1, 1], [], []>} : vector<128x64xbf16>, vector<64x8xbf16>, vector<128x8xf32> -> vector<128x8xf32>
    %c0_17 = arith.constant 0 : index
    %c0_18 = arith.constant 0 : index
    %21 = vector.load %arg7[%c0_17, %c0_18] : memref<1x8xf32, #tpu.memory_space<vmem>>, vector<1x8xf32>
    %22 = vector.broadcast %21 : vector<1x8xf32> to vector<128x8xf32>
    %23 = arith.addf %20, %22 : vector<128x8xf32>
    %c0_19 = arith.constant 0 : index
    %c0_20 = arith.constant 0 : index
    %24 = vector.load %arg9[%c0_19, %c0_20] : memref<128x8xf32, #tpu.memory_space<vmem>>, vector<128x8xf32>
    tpu.vector_store %arg9[%c0_19, %c0_20], %23 {strides = array<i32>} : memref<128x8xf32, #tpu.memory_space<vmem>>, vector<128x8xf32>,
    return
  }
  func.func @transform_0(%arg0: i32) -> (i32, i32) {
    %c0_i32 = arith.constant 0 : i32
    %c0_i32_0 = arith.constant 0 : i32
    return %arg0, %c0_i32 : i32, i32
  }
  func.func @transform_1(%arg0: i32) -> (i32, i32) {
    %c0_i32 = arith.constant 0 : i32
    %c0_i32_0 = arith.constant 0 : i32
    %c0_i32_1 = arith.constant 0 : i32
    return %c0_i32, %c0_i32_0 : i32, i32
  }
  func.func @transform_2(%arg0: i32) -> (i32, i32) {
    %c0_i32 = arith.constant 0 : i32
    %c0_i32_0 = arith.constant 0 : i32
    %c0_i32_1 = arith.constant 0 : i32
    return %c0_i32, %c0_i32_0 : i32, i32
  }
  func.func @transform_3(%arg0: i32) -> (i32, i32) {
    %c0_i32 = arith.constant 0 : i32
    %c0_i32_0 = arith.constant 0 : i32
    %c0_i32_1 = arith.constant 0 : i32
    return %c0_i32, %c0_i32_0 : i32, i32
  }
  func.func @transform_4(%arg0: i32) -> (i32, i32) {
    %c0_i32 = arith.constant 0 : i32
    %c0_i32_0 = arith.constant 0 : i32
    %c0_i32_1 = arith.constant 0 : i32
    return %c0_i32, %c0_i32_0 : i32, i32
  }
  func.func @transform_5(%arg0: i32) -> (i32, i32) {
    %c0_i32 = arith.constant 0 : i32
    %c0_i32_0 = arith.constant 0 : i32
    %c0_i32_1 = arith.constant 0 : i32
    return %c0_i32, %c0_i32_0 : i32, i32
  }
  func.func @transform_6(%arg0: i32) -> (i32, i32) {
    %c0_i32 = arith.constant 0 : i32
    %c0_i32_0 = arith.constant 0 : i32
    %c0_i32_1 = arith.constant 0 : i32
    return %c0_i32, %c0_i32_0 : i32, i32
  }
  func.func @transform_7(%arg0: i32) -> (i32, i32) {
    %c0_i32 = arith.constant 0 : i32
    %c0_i32_0 = arith.constant 0 : i32
    return %arg0, %c0_i32 : i32, i32
  }
  func.func @transform_8(%arg0: i32) -> (i32, i32) {
    %c0_i32 = arith.constant 0 : i32
    %c0_i32_0 = arith.constant 0 : i32
    return %arg0, %c0_i32 : i32, i32
  }
}

</mosaic_0001>

<bundles_post_ra>
// kernel: tpu_custom_call.1
= control target key start
LH: loop header
LB: loop body
LE: loop exit
PB: predicated region body
PF: predicated region fallthrough
CT: control target
= control target key end

     0   :  { %s2422_s0 = inlined_call_operand.vmem [shape: f32[240,64], index: 0, kind: input, shape index: {}]   ;;  %s2423_s1 = inlined_call_operand.vmem [shape: bf16[64,64], index: 1, kind: input, shape index: {}]   ;;  %s2424_s2 = inlined_call_operand.vmem [shape: f32[1,64], index: 2, kind: input, shape index: {}]   ;;  %s2425_s3 = inlined_call_operand.vmem [shape: bf16[64,64], index: 3, kind: input, shape index: {}]   ;;  %s2426_s4 = inlined_call_operand.vmem [shape: f32[1,64], index: 4, kind: input, shape index: {}]   ;;  %s2427_s5 = inlined_call_operand.vmem [shape: bf16[64,8], index: 5, kind: input, shape index: {}]   ;;  %s2428_s6 = inlined_call_operand.vmem [shape: f32[1,8], index: 6, kind: input, shape index: {}]   ;;  %s2429_s7 = inlined_call_operand.vmem [shape: f32[240,64], index: 7, kind: output, shape index: {0}]   ;;  %s2430_s8 = inlined_call_operand.vmem [shape: f32[240,8], index: 8, kind: output, shape index: {1}]  }
   0x1   :  { %2431 = sst [smem:[#allocation4_spill]] %s2422_s0 }
   0x2   :  { %s2017_s27 = smov 0   ;;  %s2019_s28 = smov 0  }
   0x3   :  { %s2021_s29 = smov 0  }
   0x4 LB: > { %s2030_s30 = sadd.s32 4294967295, %s1906_s29   ;;  %s2032_s9 = sadd.s32 1, %s1906_s29   ;;  %s1906_s29 = sphi %s2021_s29, %s2442_s29   ;;  %s1902_s28 = sphi %s2019_s28, %s2441_s28   ;;  %s1898_s27 = sphi %s2017_s27, %s2440_s27  }
   0x5   : > { %s175_s10 = ssub.s32 %s1906_s29, %s2032_s9  ;;  %s178_s11 = sadd.s32 1, %s1902_s28 }
   0x6   : > { %p176_p0 = scmp.eq.s32.totalorder %s175_s10, 0  ;;  %p188_p1 = scmp.ne.s32.totalorder %s1902_s28, %s1898_s27 }
   0x7   : > { %p189_p2 = scmp.eq.s32.totalorder %s2030_s30, 1  ;;  %p1458_p3 = scmp.ge.s32.totalorder %s1906_s29, 1 }
   0x8   : > { %s2040_s12 = scalar_select %p176_p0, %s1902_s28, %s178_s11  }
   0x9   : > { %p2042_p4 = por %p189_p2, %p188_p1  ;;  %p274_p5 = scmp.lt.s32.totalorder %s1906_s29, 3 }
   0xb   : > { %p275_p6 = pnand %p1458_p3, %p274_p5 }
   0xc   : > { %s2050_s16 = sshll.u32 (!%p275_p6), %s2030_s30, 4  ;;  %s2433_s0 = sld [smem:[#allocation4_spill]] (!%p275_p6) }
   0xd   : > { %278 = sbr.rel (%p275_p6) target bundleno = 760 (0x2f8), region = 48  ;;  %p320_p7 = scmp.lt.s32.totalorder (!%p275_p6), %s2050_s16, 29 }
   0xe   : > { %s306_s15 = sand.u32 (!%p275_p6), 1, %s1898_s27  }
  0x12   : > { %v1808_v0 = vld [vmem:[%s2423_s1 + $0x18] sm:$0xff]   ;;  %v1809_v1 = vld [vmem:[%s2423_s1 + $0x10] sm:$0xff]   ;;  %s321_s19 = scalar_select %p320_p7, %s2050_s16, 29  ;;  %v1810_v2 = vld [vmem:[%s2423_s1 + $0x8] sm:$0xff]   ;;  %vm403_vm0 = vcmask 523264   ;;  %vm909_vm1 = vcmask 64512  }
  0x13   : > { %1576 = vmatprep.subr.bf16.mxu0 %v1808_v0  ;;  %1648 = vmatprep.subr.bf16.mxu1 %v1808_v0  ;;  %v1811_v5 = vld [vmem:[%s2423_s1] sm:$0xff]   ;;  %v1812_v13 = vld [vmem:[%s2425_s3 + $0x18] sm:$0xff]   ;;  %v1813_v29 = vld [vmem:[%s2425_s3 + $0x10] sm:$0xff]   ;;  %s938_s23 = ssub.s32 (%p2042_p4), 30, %s2050_s16  ;;  %s1534_s24 = sshll.u32 (%p2042_p4), %s2030_s30, 7 }
  0x14   : > { %1577 = vmatpush3.bf16.msra.mxu0 %v1808_v0  ;;  %1652 = vmatpush3.bf16.msra.mxu1 %v1808_v0  ;;  %s1462_s22 = sshll.u32 %s321_s19, 3  ;;  %v1814_v30 = vld [vmem:[%s2425_s3 + $0x8] sm:$0xff]   ;;  %v1815_v31 = vld [vmem:[%s2425_s3] sm:$0xff]   ;;  %v1816_v32 = vld [vmem:[%s2427_s5 + $0x18] sm:$0xff]   ;;  %s2133_s19 = sshll.u32 %s306_s15, 7 }
  0x15   : > { %1578 = vmatprep.subr.bf16.mxu0 %v1809_v1  ;;  %1649 = vmatprep.subr.bf16.mxu1 %v1809_v1  ;;  %s2063_s25 = scalar_lea.vmem %s2433_s0, %s1462_s22  ;;  %v1463_v37 = vld [vmem:[%s2424_s2] ss:$0 sm:$0xff]  ;;  %s2138_s20 = scalar_lea.vmem [#allocation2], %s2133_s19  }
  0x16   : > { %v340_v3 = vld [vmem:[%s2063_s25] sm:$0xff]  ;;  %v341_v4 = vld [vmem:[%s2063_s25 + $0x8] sm:$0xff]  ;;  %v342_v7 = vld [vmem:[%s2063_s25 + $0x10] sm:$0xff]  ;;  %s2198_s22 = scalar_lea.vmem [#allocation3], %s2133_s19   ;;  %p939_p8 = scmp.lt.s32.totalorder (%p2042_p4), %s938_s23, 16 }
  0x17   : > { %v356_v6 = vpack.c.bf16 %v341_v4, %v340_v3  ;;  %v343_v8 = vld [vmem:[%s2063_s25 + $0x18] sm:$0xff]  ;;  %v348_v9 = vld [vmem:[%s2063_s25 + $0x40] sm:$0xff]  ;;  %v345_v11 = vld [vmem:[%s2063_s25 + $0x28] sm:$0xff]  ;;  %s2239_s29 = scalar_lea.vmem (%p2042_p4), %s2429_s7, %s1534_s24  }
  0x18   : > { %1579 = vmatpush3.bf16.msra.mxu0 %v1809_v1  ;;  %1653 = vmatpush3.bf16.msra.mxu1 %v1809_v1  ;;  %v344_v10 = vld [vmem:[%s2063_s25 + $0x20] sm:$0xff]  ;;  %v349_v12 = vld [vmem:[%s2063_s25 + $0x48] sm:$0xff]  ;;  %v350_v15 = vld [vmem:[%s2063_s25 + $0x50] sm:$0xff]  ;;  %v357_v19 = vpack.c.bf16 %v343_v8, %v342_v7 }
  0x19   : > { %1580 = vmatprep.subr.bf16.mxu0 %v1810_v2  ;;  %1650 = vmatprep.subr.bf16.mxu1 %v1810_v2  ;;  %v360_v14 = vpack.c.bf16 %v349_v12, %v348_v9  ;;  %v351_v16 = vld [vmem:[%s2063_s25 + $0x58] sm:$0xff]  ;;  %v352_v17 = vld [vmem:[%s2063_s25 + $0x60] sm:$0xff]  ;;  %v353_v18 = vld [vmem:[%s2063_s25 + $0x68] sm:$0xff]  ;;  %v358_v21 = vpack.c.bf16 %v345_v11, %v344_v10 }
  0x1a   : > { %1584 = vmatprep.mubr.msk.bf16.mxu0 %vm403_vm0, %v356_v6  ;;  %v361_v20 = vpack.c.bf16 %v351_v16, %v350_v15  ;;  %v362_v22 = vpack.c.bf16 %v353_v18, %v352_v17  ;;  %v346_v23 = vld [vmem:[%s2063_s25 + $0x30] sm:$0xff]  ;;  %v347_v24 = vld [vmem:[%s2063_s25 + $0x38] sm:$0xff] }
  0x1b   : > { %1592 = vmatprep.mubr.msk.bf16.mxu1 %vm403_vm0, %v360_v14  ;;  %v354_v25 = vld [vmem:[%s2063_s25 + $0x70] sm:$0xff]  ;;  %v355_v26 = vld [vmem:[%s2063_s25 + $0x78] sm:$0xff]  ;;  %v359_v27 = vpack.c.bf16 %v347_v24, %v346_v23 }
  0x1c   : > { %1581 = vmatpush3.bf16.msra.mxu0 %v1810_v2  ;;  %1654 = vmatpush3.bf16.msra.mxu1 %v1810_v2  ;;  %v363_v28 = vpack.c.bf16 %v355_v26, %v354_v25  ;;  %v1817_v26 = vld [vmem:[%s2427_s5 + $0x10] sm:$0xff]  }
  0x1d   : > { %1582 = vmatprep.subr.bf16.mxu0 %v1811_v5  ;;  %1651 = vmatprep.subr.bf16.mxu1 %v1811_v5 }
  0x20   : > { %1583 = vmatpush3.bf16.msra.mxu0 %v1811_v5  ;;  %1655 = vmatpush3.bf16.msra.mxu1 %v1811_v5 }
  0x21   : > { %1600 = vmatprep.subr.bf16.mxu1 %v1812_v13  ;;  %1624 = vmatprep.subr.bf16.mxu0 %v1816_v32 }
  0x23   : > { %1585 = vmatmul.mubr.msk.bf16.vlgmr.msra.gmra.mxu0 %vm403_vm0, %v357_v19  ;;  %1593 = vmatmul.mubr.msk.bf16.vlgmr.msra.gmra.mxu1 %vm403_vm0, %v361_v20 }
  0x24   : > { %1588 = vmatprep.mubr.msk.bf16.mxu0 %vm403_vm0, %v358_v21  ;;  %1596 = vmatprep.mubr.msk.bf16.mxu1 %vm403_vm0, %v362_v22 }
  0x25   : > { %1601 = vmatpush3.bf16.msra.mxu1 %v1812_v13  ;;  %1625 = vmatpush3.bf16.msra.mxu0 %v1816_v32 }
  0x26   : > { %1602 = vmatprep.subr.bf16.mxu1 %v1813_v29  ;;  %1626 = vmatprep.subr.bf16.mxu0 %v1817_v26 }
  0x29   : > { %1603 = vmatpush3.bf16.msra.mxu1 %v1813_v29  ;;  %1627 = vmatpush3.bf16.msra.mxu0 %v1817_v26  ;;  %v2131_v29 = vld [vmem:[%s2426_s4] ss:$0 sm:$0xff] }
  0x2a   : > { %1604 = vmatprep.subr.bf16.mxu1 %v1814_v30 }
  0x2b   : > { %1589 = vmatmul.mubr.msk.bf16.gmra.mxu0 %vm403_vm0, %v359_v27  ;;  %1597 = vmatmul.mubr.msk.bf16.gmra.mxu1 %vm403_vm0, %v363_v28  ;;  %v1818_v27 = vld [vmem:[%s2427_s5 + $0x8] sm:$0xff]   ;;  %v1819_v28 = vld [vmem:[%s2427_s5] sm:$0xff]  }
  0x2c   : > { %1628 = vmatprep.subr.bf16.mxu0 %v1818_v27 }
  0x2d   : > { %1605 = vmatpush3.bf16.msra.mxu1 %v1814_v30  ;;  %1629 = vmatpush3.bf16.msra.mxu0 %v1818_v27 }
  0x2e   : > { %1606 = vmatprep.subr.bf16.mxu1 %v1815_v31  ;;  %1630 = vmatprep.subr.bf16.mxu0 %v1819_v28 }
  0x31   : > { %1607 = vmatpush3.bf16.msra.mxu1 %v1815_v31  ;;  %1631 = vmatpush3.bf16.msra.mxu0 %v1819_v28 }
  0xe3   : > { %v1586_v33 = vpop.f32.mrf.mxu0  ;;  %v1594_v34 = vpop.f32.mrf.mxu1 }
  0xe4   : > { %v471_v42 = vadd.f32 %v1586_v33, %v1463_v37  ;;  %v503_v12 = vadd.f32 %v1594_v34, %v1463_v37 }
  0xe5   : > { %v462_v35 = vpop.f32.mrf.mxu0  ;;  %v494_v36 = vpop.f32.mrf.mxu1 }
  0xe6   : > { %v463_v40 = vadd.f32 %v1463_v37, %v462_v35  ;;  %v527_v51 = vmax.f32 %v471_v42, 0.0  ;;  %v495_v55 = vadd.f32 %v1463_v37, %v494_v36  ;;  %v535_v17 = vmax.f32 %v503_v12, 0.0 }
  0xe7   : > { %v1587_v38 = vpop.f32.mrf.mxu0  ;;  %v1595_v39 = vpop.f32.mrf.mxu1 }
  0xe8   : > { %v474_v41 = vadd.f32 %v1587_v38, %v1463_v37  ;;  %v525_v49 = vmax.f32 %v463_v40, 0.0  ;;  %v533_v0 = vmax.f32 %v495_v55, 0.0  ;;  %v506_v14 = vadd.f32 %v1595_v39, %v1463_v37 }
  0xe9   : > { %v465_v43 = vpop.f32.mrf.mxu0  ;;  %v497_v44 = vpop.f32.mrf.mxu1 }
  0xea   : > { %v466_v45 = vadd.f32 %v1463_v37, %v465_v43  ;;  %v528_v46 = vmax.f32 %v474_v41, 0.0  ;;  %v498_v56 = vadd.f32 %v1463_v37, %v497_v44  ;;  %v536_v18 = vmax.f32 %v506_v14, 0.0 }
  0xeb   : > { %v1590_v47 = vpop.f32.mrf.mxu0  ;;  %v1598_v48 = vpop.f32.mrf.mxu1 }
  0xec   : > { %v526_v50 = vmax.f32 %v466_v45, 0.0  ;;  %v542_v57 = vpack.c.bf16 %v528_v46, %v527_v51  ;;  %v487_v62 = vadd.f32 %v1590_v47, %v1463_v37  ;;  %v534_v2 = vmax.f32 %v498_v56, 0.0 }
  0xed   : > { %v478_v52 = vpop.f32.mrf.mxu0  ;;  %v510_v53 = vpop.f32.mrf.mxu1  ;;  %v546_v20 = vpack.c.bf16 %v536_v18, %v535_v17  ;;  %v519_v21 = vadd.f32 %v1598_v48, %v1463_v37 }
  0xee   : > { %v541_v54 = vpack.c.bf16 %v526_v50, %v525_v49  ;;  %v479_v60 = vadd.f32 %v1463_v37, %v478_v52  ;;  %v531_v7 = vmax.f32 %v487_v62, 0.0  ;;  %v545_v9 = vpack.c.bf16 %v534_v2, %v533_v0 }
  0xef   : > { %v1591_v58 = vpop.f32.mrf.mxu0  ;;  %v1599_v59 = vpop.f32.mrf.mxu1  ;;  %v511_v10 = vadd.f32 %v1463_v37, %v510_v53  ;;  %v539_v23 = vmax.f32 %v519_v21, 0.0 }
  0xf0   : > { %v490_v61 = vadd.f32 %v1591_v58, %v1463_v37  ;;  %1608 = vmatprep.mubr.msk.bf16.mxu1 %vm403_vm0, %v541_v54  ;;  %v529_v5 = vmax.f32 %v479_v60, 0.0  ;;  %v522_v22 = vadd.f32 %v1599_v59, %v1463_v37 }
  0xf1   : > { %v481_v63 = vpop.f32.mrf.mxu0  ;;  %1609 = vmatmul.mubr.msk.bf16.vlgmr.msra.gmra.mxu1 %vm403_vm0, %v542_v57  ;;  %v513_v4 = vpop.f32.mrf.mxu1  ;;  %v537_v15 = vmax.f32 %v511_v10, 0.0 }
  0xf2   : > { %v482_v1 = vadd.f32 %v1463_v37, %v481_v63  ;;  %v532_v3 = vmax.f32 %v490_v61, 0.0  ;;  %v514_v11 = vadd.f32 %v1463_v37, %v513_v4  ;;  %v540_v24 = vmax.f32 %v522_v22, 0.0  ;;  %v1489_v22 = vld [vmem:[%s2428_s6] ss:$0 sm:$0xff] }
  0xf4   : > { %v530_v6 = vmax.f32 %v482_v1, 0.0  ;;  %v544_v13 = vpack.c.bf16 %v532_v3, %v531_v7  ;;  %v538_v16 = vmax.f32 %v514_v11, 0.0  ;;  %v548_v25 = vpack.c.bf16 %v540_v24, %v539_v23 }
  0xf6   : > { %v543_v8 = vpack.c.bf16 %v530_v6, %v529_v5  ;;  %v547_v19 = vpack.c.bf16 %v538_v16, %v537_v15 }
  0xf8   : > { %1612 = vmatprep.mubr.msk.bf16.mxu1 %vm403_vm0, %v543_v8 }
  0xf9   : > { %1613 = vmatmul.mubr.msk.bf16.gmra.mxu1 %vm403_vm0, %v544_v13 }
  0xfa   : > { %1616 = vmatprep.mubr.msk.bf16.mxu1 %vm403_vm0, %v545_v9 }
 0x101   : > { %1617 = vmatmul.mubr.msk.bf16.gmra.mxu1 %vm403_vm0, %v546_v20 }
 0x102   : > { %1620 = vmatprep.mubr.msk.bf16.mxu1 %vm403_vm0, %v547_v19 }
 0x109   : > { %1621 = vmatmul.mubr.msk.bf16.gmra.mxu1 %vm403_vm0, %v548_v25 }
 0x1b1   : > { %v1610_v30 = vpop.f32.mrf.mxu1 }
 0x1b2   : > { %v655_v31 = vadd.f32 %v1610_v30, %v2131_v29 }
 0x1b3   : > { %v646_v32 = vpop.f32.mrf.mxu1 }
 0x1b4   : > { %v711_v33 = vmax.f32 %v655_v31, 0.0  ;;  %v647_v34 = vadd.f32 %v2131_v29, %v646_v32 }
 0x1b5   : > { %v1611_v35 = vpop.f32.mrf.mxu1 }
 0x1b6   : > { %727 = vst.msk [vmem:[%s2138_s20 + $0x10] sm:$0xff] %vm403_vm0, %v711_v33  ;;  %v709_v36 = vmax.f32 %v647_v34, 0.0  ;;  %v658_v37 = vadd.f32 %v1611_v35, %v2131_v29 }
 0x1b7   : > { %v649_v38 = vpop.f32.mrf.mxu1 }
 0x1b8   : > { %725 = vst.msk [vmem:[%s2138_s20] sm:$0xff] %vm403_vm0, %v709_v36  ;;  %v712_v39 = vmax.f32 %v658_v37, 0.0  ;;  %v650_v40 = vadd.f32 %v2131_v29, %v649_v38 }
 0x1b9   : > { %v1614_v41 = vpop.f32.mrf.mxu1 }
 0x1ba   : > { %728 = vst.msk [vmem:[%s2138_s20 + $0x18] sm:$0xff] %vm403_vm0, %v712_v39  ;;  %v710_v42 = vmax.f32 %v650_v40, 0.0  ;;  %v671_v43 = vadd.f32 %v1614_v41, %v2131_v29  ;;  %v742_v48 = vpack.c.bf16 %v712_v39, %v711_v33 }
 0x1bb   : > { %v662_v44 = vpop.f32.mrf.mxu1 }
 0x1bc   : > { %726 = vst.msk [vmem:[%s2138_s20 + $0x8] sm:$0xff] %vm403_vm0, %v710_v42  ;;  %v741_v45 = vpack.c.bf16 %v710_v42, %v709_v36  ;;  %v715_v46 = vmax.f32 %v671_v43, 0.0  ;;  %v663_v47 = vadd.f32 %v2131_v29, %v662_v44 }
 0x1bd   : > { %v1615_v49 = vpop.f32.mrf.mxu1 }
 0x1be   : > { %731 = vst.msk [vmem:[%s2138_s20 + $0x30] sm:$0xff] %vm403_vm0, %v715_v46  ;;  %v713_v50 = vmax.f32 %v663_v47, 0.0  ;;  %v674_v51 = vadd.f32 %v1615_v49, %v2131_v29  ;;  %1632 = vmatprep.mubr.msk.bf16.mxu0 %vm403_vm0, %v741_v45 }
 0x1bf   : > { %v665_v52 = vpop.f32.mrf.mxu1  ;;  %1633 = vmatmul.mubr.msk.bf16.vlgmr.msra.gmra.mxu0 %vm403_vm0, %v742_v48 }
 0x1c0   : > { %729 = vst.msk [vmem:[%s2138_s20 + $0x20] sm:$0xff] %vm403_vm0, %v713_v50  ;;  %v716_v53 = vmax.f32 %v674_v51, 0.0  ;;  %v666_v54 = vadd.f32 %v2131_v29, %v665_v52 }
 0x1c1   : > { %v1618_v55 = vpop.f32.mrf.mxu1 }
 0x1c2   : > { %732 = vst.msk [vmem:[%s2138_s20 + $0x38] sm:$0xff] %vm403_vm0, %v716_v53  ;;  %v714_v56 = vmax.f32 %v666_v54, 0.0  ;;  %v687_v57 = vadd.f32 %v1618_v55, %v2131_v29  ;;  %v744_v62 = vpack.c.bf16 %v716_v53, %v715_v46 }
 0x1c3   : > { %v678_v58 = vpop.f32.mrf.mxu1 }
 0x1c4   : > { %730 = vst.msk [vmem:[%s2138_s20 + $0x28] sm:$0xff] %vm403_vm0, %v714_v56  ;;  %v743_v59 = vpack.c.bf16 %v714_v56, %v713_v50  ;;  %v719_v60 = vmax.f32 %v687_v57, 0.0  ;;  %v679_v61 = vadd.f32 %v2131_v29, %v678_v58 }
 0x1c5   : > { %v1619_v63 = vpop.f32.mrf.mxu1 }
 0x1c6   : > { %735 = vst.msk [vmem:[%s2138_s20 + $0x50] sm:$0xff] %vm403_vm0, %v719_v60  ;;  %v717_v0 = vmax.f32 %v679_v61, 0.0  ;;  %v690_v1 = vadd.f32 %v1619_v63, %v2131_v29  ;;  %1636 = vmatprep.mubr.msk.bf16.mxu0 %vm403_vm0, %v743_v59 }
 0x1c7   : > { %v681_v2 = vpop.f32.mrf.mxu1  ;;  %1637 = vmatmul.mubr.msk.bf16.gmra.mxu0 %vm403_vm0, %v744_v62 }
 0x1c8   : > { %733 = vst.msk [vmem:[%s2138_s20 + $0x40] sm:$0xff] %vm403_vm0, %v717_v0  ;;  %v720_v3 = vmax.f32 %v690_v1, 0.0  ;;  %v682_v4 = vadd.f32 %v2131_v29, %v681_v2 }
 0x1c9   : > { %v1622_v5 = vpop.f32.mrf.mxu1 }
 0x1ca   : > { %736 = vst.msk [vmem:[%s2138_s20 + $0x58] sm:$0xff] %vm403_vm0, %v720_v3  ;;  %v718_v6 = vmax.f32 %v682_v4, 0.0  ;;  %v703_v7 = vadd.f32 %v1622_v5, %v2131_v29  ;;  %v746_v12 = vpack.c.bf16 %v720_v3, %v719_v60 }
 0x1cb   : > { %v694_v8 = vpop.f32.mrf.mxu1 }
 0x1cc   : > { %734 = vst.msk [vmem:[%s2138_s20 + $0x48] sm:$0xff] %vm403_vm0, %v718_v6  ;;  %v745_v9 = vpack.c.bf16 %v718_v6, %v717_v0  ;;  %v723_v10 = vmax.f32 %v703_v7, 0.0  ;;  %v695_v11 = vadd.f32 %v2131_v29, %v694_v8 }
 0x1cd   : > { %v1623_v13 = vpop.f32.mrf.mxu1 }
 0x1ce   : > { %739 = vst.msk [vmem:[%s2138_s20 + $0x70] sm:$0xff] %vm403_vm0, %v723_v10  ;;  %v721_v14 = vmax.f32 %v695_v11, 0.0  ;;  %v706_v15 = vadd.f32 %v1623_v13, %v2131_v29  ;;  %1640 = vmatprep.mubr.msk.bf16.mxu0 %vm403_vm0, %v745_v9 }
 0x1cf   : > { %v697_v16 = vpop.f32.mrf.mxu1  ;;  %1641 = vmatmul.mubr.msk.bf16.gmra.mxu0 %vm403_vm0, %v746_v12 }
 0x1d0   : > { %737 = vst.msk [vmem:[%s2138_s20 + $0x60] sm:$0xff] %vm403_vm0, %v721_v14  ;;  %v724_v17 = vmax.f32 %v706_v15, 0.0  ;;  %v698_v18 = vadd.f32 %v2131_v29, %v697_v16 }
 0x1d2   : > { %740 = vst.msk [vmem:[%s2138_s20 + $0x78] sm:$0xff] %vm403_vm0, %v724_v17  ;;  %v722_v19 = vmax.f32 %v698_v18, 0.0  ;;  %v748_v21 = vpack.c.bf16 %v724_v17, %v723_v10 }
 0x1d4   : > { %738 = vst.msk [vmem:[%s2138_s20 + $0x68] sm:$0xff] %vm403_vm0, %v722_v19  ;;  %v747_v20 = vpack.c.bf16 %v722_v19, %v721_v14 }
 0x1d6   : > { %1644 = vmatprep.mubr.msk.bf16.mxu0 %vm403_vm0, %v747_v20 }
 0x1d7   : > { %1645 = vmatmul.mubr.msk.bf16.gmra.mxu0 %vm403_vm0, %v748_v21 }
 0x27f   : > { %v1634_v23 = vpop.f32.mrf.mxu0 }
 0x280   : > { %v855_v24 = vadd.f32 %v1634_v23, %v1489_v22 }
 0x281   : > { %v846_v25 = vpop.f32.mrf.mxu0 }
 0x282   : > { %912 = vst.msk [vmem:[%s2198_s22 + $0x10] sm:$0xff] %vm909_vm1, %v855_v24  ;;  %v847_v26 = vadd.f32 %v1489_v22, %v846_v25 }
 0x283   : > { %v1635_v27 = vpop.f32.mrf.mxu0 }
 0x284   : > { %910 = vst.msk [vmem:[%s2198_s22] sm:$0xff] %vm909_vm1, %v847_v26  ;;  %v858_v28 = vadd.f32 %v1635_v27, %v1489_v22 }
 0x285   : > { %v849_v29 = vpop.f32.mrf.mxu0 }
 0x286   : > { %913 = vst.msk [vmem:[%s2198_s22 + $0x18] sm:$0xff] %vm909_vm1, %v858_v28  ;;  %v850_v30 = vadd.f32 %v1489_v22, %v849_v29 }
 0x287   : > { %v1638_v31 = vpop.f32.mrf.mxu0 }
 0x288   : > { %911 = vst.msk [vmem:[%s2198_s22 + $0x8] sm:$0xff] %vm909_vm1, %v850_v30  ;;  %v871_v32 = vadd.f32 %v1638_v31, %v1489_v22 }
 0x289   : > { %v862_v33 = vpop.f32.mrf.mxu0 }
 0x28a   : > { %916 = vst.msk [vmem:[%s2198_s22 + $0x30] sm:$0xff] %vm909_vm1, %v871_v32  ;;  %v863_v34 = vadd.f32 %v1489_v22, %v862_v33 }
 0x28b   : > { %v1639_v35 = vpop.f32.mrf.mxu0 }
 0x28c   : > { %914 = vst.msk [vmem:[%s2198_s22 + $0x20] sm:$0xff] %vm909_vm1, %v863_v34  ;;  %v874_v36 = vadd.f32 %v1639_v35, %v1489_v22 }
 0x28d   : > { %v865_v37 = vpop.f32.mrf.mxu0 }
 0x28e   : > { %917 = vst.msk [vmem:[%s2198_s22 + $0x38] sm:$0xff] %vm909_vm1, %v874_v36  ;;  %v866_v38 = vadd.f32 %v1489_v22, %v865_v37 }
 0x28f   : > { %v1642_v39 = vpop.f32.mrf.mxu0 }
 0x290   : > { %915 = vst.msk [vmem:[%s2198_s22 + $0x28] sm:$0xff] %vm909_vm1, %v866_v38  ;;  %v887_v40 = vadd.f32 %v1642_v39, %v1489_v22 }
 0x291   : > { %v878_v41 = vpop.f32.mrf.mxu0 }
 0x292   : > { %920 = vst.msk [vmem:[%s2198_s22 + $0x50] sm:$0xff] %vm909_vm1, %v887_v40  ;;  %v879_v42 = vadd.f32 %v1489_v22, %v878_v41 }
 0x293   : > { %v1643_v43 = vpop.f32.mrf.mxu0 }
 0x294   : > { %918 = vst.msk [vmem:[%s2198_s22 + $0x40] sm:$0xff] %vm909_vm1, %v879_v42  ;;  %v890_v44 = vadd.f32 %v1643_v43, %v1489_v22 }
 0x295   : > { %v881_v45 = vpop.f32.mrf.mxu0 }
 0x296   : > { %921 = vst.msk [vmem:[%s2198_s22 + $0x58] sm:$0xff] %vm909_vm1, %v890_v44  ;;  %v882_v46 = vadd.f32 %v1489_v22, %v881_v45 }
 0x297   : > { %v1646_v47 = vpop.f32.mrf.mxu0 }
 0x298   : > { %919 = vst.msk [vmem:[%s2198_s22 + $0x48] sm:$0xff] %vm909_vm1, %v882_v46  ;;  %v903_v48 = vadd.f32 %v1646_v47, %v1489_v22 }
 0x299   : > { %v894_v49 = vpop.f32.mrf.mxu0 }
 0x29a   : > { %924 = vst.msk [vmem:[%s2198_s22 + $0x70] sm:$0xff] %vm909_vm1, %v903_v48  ;;  %v895_v50 = vadd.f32 %v1489_v22, %v894_v49 }
 0x29b   : > { %v1647_v51 = vpop.f32.mrf.mxu0 }
 0x29c   : > { %922 = vst.msk [vmem:[%s2198_s22 + $0x60] sm:$0xff] %vm909_vm1, %v895_v50  ;;  %v906_v52 = vadd.f32 %v1647_v51, %v1489_v22  ;;  %936 = sbr.rel (!%p2042_p4) target bundleno = 714 (0x2ca), region = 52 }
 0x29d   : > { %v897_v53 = vpop.f32.mrf.mxu0 }
 0x29e   : > { %925 = vst.msk [vmem:[%s2198_s22 + $0x78] sm:$0xff] %vm909_vm1, %v906_v52  ;;  %v898_v54 = vadd.f32 %v1489_v22, %v897_v53 }
 0x2a0   : > { %923 = vst.msk [vmem:[%s2198_s22 + $0x68] sm:$0xff] %vm909_vm1, %v898_v54 }
 0x2a1   : > { %s2444_s23 = smov (!%p939_p8, %s938_s23), 16 }
 0x2a2   : > { %s1505_s10 = sshll.u32 %s2444_s23, 7 }
 0x2a3   : > { %p1508_p9 = scmp.eq.s32.totalorder %s1505_s10, 0 }
 0x2a4   : > { %s2245_s11 = sshrl.u32 (!%p1508_p9), %s2444_s23, 4 }
 0x2a5   : > { %947 = sbr.rel (%p1508_p9) target bundleno = 714 (0x2ca), region = 56  ;;  %p1509_p10 = scmp.le.s32.totalorder (!%p1508_p9), %s2245_s11, 0 }
 0x2aa   : > { %1374 = sbr.rel (%p1509_p10) target bundleno = 697 (0x2b9), region = 204  ;;  %s2434_s14 = smov (!%p1509_p10), %s2239_s29 }
 0x2ab   : > { %s2435_s15 = smov (!%p1509_p10), %s2138_s20  ;;  %s2254_s17 = smov (!%p1509_p10), 0  }
 0x2ac   : > { %s2256_s18 = smov (!%p1509_p10), 0  }
 0x2af LB: >> { %v1040_v55 = vld [vmem:[%s1914_s15] sm:$0xff]  ;;  %v1042_v56 = vld [vmem:[%s1914_s15 + $0x8] sm:$0xff]  ;;  %v1044_v57 = vld [vmem:[%s1914_s15 + $0x10] sm:$0xff]  ;;  %s1072_s19 = sadd.s32 1, %s1918_s17  ;;  %s1034_s18 = sadd.s32 1, %s1922_s18   ;;  %s1922_s18 = sphi %s2256_s18, %s1034_s18   ;;  %s1918_s17 = sphi %s2254_s17, %s2436_s17   ;;  %s1914_s15 = sphi %s2435_s15, %s1077_s15   ;;  %s1910_s14 = sphi %s2434_s14, %s1078_s14  }
 0x2b0   : >> { %1041 = vst [vmem:[%s1910_s14] sm:$0xff] %v1040_v55  ;;  %1043 = vst [vmem:[%s1910_s14 + $0x8] sm:$0xff] %v1042_v56  ;;  %v1046_v58 = vld [vmem:[%s1914_s15 + $0x18] sm:$0xff]  ;;  %v1048_v59 = vld [vmem:[%s1914_s15 + $0x20] sm:$0xff]  ;;  %p1073_p11 = scmp.ge.s32.totalorder %s1072_s19, %s2245_s11  ;;  %p1033_p12 = scmp.ge.s32.totalorder %s1034_s18, %s2245_s11 }
 0x2b1   : >> { %1045 = vst [vmem:[%s1910_s14 + $0x10] sm:$0xff] %v1044_v57  ;;  %v1050_v60 = vld [vmem:[%s1914_s15 + $0x28] sm:$0xff]  ;;  %1047 = vst [vmem:[%s1910_s14 + $0x18] sm:$0xff] %v1046_v58  ;;  %v1052_v61 = vld [vmem:[%s1914_s15 + $0x30] sm:$0xff] }
 0x2b2   : >> { %1049 = vst [vmem:[%s1910_s14 + $0x20] sm:$0xff] %v1048_v59  ;;  %1051 = vst [vmem:[%s1910_s14 + $0x28] sm:$0xff] %v1050_v60  ;;  %v1054_v62 = vld [vmem:[%s1914_s15 + $0x38] sm:$0xff]  ;;  %v1056_v63 = vld [vmem:[%s1914_s15 + $0x40] sm:$0xff]  ;;  %s2446_s19 = smov (%p1073_p11, %s1072_s19), 0 }
 0x2b3   : >> { %1053 = vst [vmem:[%s1910_s14 + $0x30] sm:$0xff] %v1052_v61  ;;  %1055 = vst [vmem:[%s1910_s14 + $0x38] sm:$0xff] %v1054_v62  ;;  %v1058_v0 = vld [vmem:[%s1914_s15 + $0x48] sm:$0xff]  ;;  %v1060_v1 = vld [vmem:[%s1914_s15 + $0x50] sm:$0xff]  ;;  %s1510_s27 = sshll.u32 %s2446_s19, 7  ;;  %s2436_s17 = smov %s2446_s19 }
 0x2b4   : >> { %1057 = vst [vmem:[%s1910_s14 + $0x40] sm:$0xff] %v1056_v63  ;;  %v1062_v2 = vld [vmem:[%s1914_s15 + $0x58] sm:$0xff]  ;;  %1059 = vst [vmem:[%s1910_s14 + $0x48] sm:$0xff] %v1058_v0  ;;  %v1064_v3 = vld [vmem:[%s1914_s15 + $0x60] sm:$0xff]  ;;  %1036 = sbr.rel (!%p1033_p12) target bundleno = 687 (0x2af), region = 210 }
 0x2b5   : >> { %1061 = vst [vmem:[%s1910_s14 + $0x50] sm:$0xff] %v1060_v1  ;;  %1063 = vst [vmem:[%s1910_s14 + $0x58] sm:$0xff] %v1062_v2  ;;  %v1066_v4 = vld [vmem:[%s1914_s15 + $0x68] sm:$0xff]  ;;  %v1068_v5 = vld [vmem:[%s1914_s15 + $0x70] sm:$0xff] }
 0x2b6   : >> { %1065 = vst [vmem:[%s1910_s14 + $0x60] sm:$0xff] %v1064_v3  ;;  %1067 = vst [vmem:[%s1910_s14 + $0x68] sm:$0xff] %v1066_v4  ;;  %v1070_v6 = vld [vmem:[%s1914_s15 + $0x78] sm:$0xff]  ;;  %s1077_s15 = scalar_lea.vmem %s2138_s20, %s1510_s27 [#allocation2]  }
 0x2b7   : >> { %1069 = vst [vmem:[%s1910_s14 + $0x70] sm:$0xff] %v1068_v5  ;;  %1071 = vst [vmem:[%s1910_s14 + $0x78] sm:$0xff] %v1070_v6  ;;  %s1078_s14 = scalar_lea.vmem %s2239_s29, %s1510_s27  }
 0x2b9 PF: > { %s2314_s21 = sand.u32 15, %s2444_s23   ;;  %s1535_s24 = sshll.u32 %s2245_s11, 7 }
 0x2ba   : > { %s1083_s25 = scalar_lea.vmem %s2138_s20, %s1535_s24 [#allocation2]   ;;  %s1085_s26 = scalar_lea.vmem %s2239_s29, %s1535_s24  }
 0x2bb   : > { %p1515_p13 = scmp.le.s32.totalorder %s2314_s21, 0 }
 0x2bc   : > { %s1924_s10 = smov (!%p1515_p13), %s1085_s26   ;;  %s1928_s27 = smov (!%p1515_p13), %s1083_s25  }
 0x2bd   : > { %1388 = sbr.rel (%p1515_p13) target bundleno = 714 (0x2ca), region = 215  ;;  %s1932_s0 = smov (!%p1515_p13), 0  }
 0x2be   : > { %s1936_s19 = smov (!%p1515_p13), 0  }
 0x2c2 LB: >> { %v1095_v7 = vld [vmem:[%s1930_s27] sm:$0xff]  ;;  %s1097_s23 = sadd.s32 1, %s1934_s0  ;;  %s1089_s19 = sadd.s32 1, %s1938_s19   ;;  %s1938_s19 = sphi %s1936_s19, %s1089_s19   ;;  %s1934_s0 = sphi %s1932_s0, %s1933_s0   ;;  %s1930_s27 = sphi %s1928_s27, %s1102_s27   ;;  %s1926_s10 = sphi %s1924_s10, %s1103_s10  }
 0x2c3   : >> { %1096 = vst [vmem:[%s1926_s10] sm:$0xff] %v1095_v7  ;;  %p1098_p0 = scmp.ge.s32.totalorder %s1097_s23, %s2314_s21  ;;  %p1088_p1 = scmp.ge.s32.totalorder %s1089_s19, %s2314_s21 }
 0x2c5   : >> { %s2448_s23 = smov (%p1098_p0, %s1097_s23), 0  ;;  %1091 = sbr.rel (!%p1088_p1) target bundleno = 706 (0x2c2), region = 221 }
 0x2c6   : >> { %s1516_s20 = sshll.u32 %s2448_s23, 3  ;;  %s1933_s0 = smov %s2448_s23  }
 0x2c7   : >> { %s1102_s27 = scalar_lea.vmem %s1083_s25, %s1516_s20 [#allocation2]   ;;  %s1103_s10 = scalar_lea.vmem %s1085_s26, %s1516_s20  }
 0x2ca PF: > { %1109 = sbr.rel (!%p2042_p4) target bundleno = 760 (0x2f8), region = 104  ;;  %s1111_s0 = ssub.s32 (%p2042_p4), 30, %s2050_s16 }
 0x2cb   : > { %s1537_s29 = sshll.u32 (%p2042_p4), %s2030_s30, 7  ;;  %p1112_p2 = scmp.lt.s32.totalorder (%p2042_p4), %s1111_s0, 16 }
 0x2cc   : > { %s2329_s15 = scalar_lea.vmem (%p2042_p4), %s2430_s8, %s1537_s29  }
 0x2cf   : > { %s2450_s0 = smov (!%p1112_p2, %s1111_s0), 16 }
 0x2d0   : > { %s1519_s17 = sshll.u32 %s2450_s0, 7 }
 0x2d1   : > { %p1522_p3 = scmp.eq.s32.totalorder %s1519_s17, 0 }
 0x2d2   : > { %s2335_s18 = sshrl.u32 (!%p1522_p3), %s2450_s0, 4 }
 0x2d3   : > { %1120 = sbr.rel (%p1522_p3) target bundleno = 760 (0x2f8), region = 108  ;;  %p1523_p4 = scmp.le.s32.totalorder (!%p1522_p3), %s2335_s18, 0 }
 0x2d8   : > { %1402 = sbr.rel (%p1523_p4) target bundleno = 743 (0x2e7), region = 226  ;;  %s2437_s30 = smov (!%p1523_p4), %s2329_s15 }
 0x2d9   : > { %s2438_s13 = smov (!%p1523_p4), %s2198_s22  ;;  %s2344_s16 = smov (!%p1523_p4), 0  }
 0x2da   : > { %s2346_s21 = smov (!%p1523_p4), 0  }
 0x2dd LB: >> { %v1213_v8 = vld [vmem:[%s1946_s13] sm:$0xff]  ;;  %v1215_v9 = vld [vmem:[%s1946_s13 + $0x8] sm:$0xff]  ;;  %v1217_v10 = vld [vmem:[%s1946_s13 + $0x10] sm:$0xff]  ;;  %s1245_s24 = sadd.s32 1, %s1950_s16  ;;  %s1207_s21 = sadd.s32 1, %s1954_s21   ;;  %s1954_s21 = sphi %s2346_s21, %s1207_s21   ;;  %s1950_s16 = sphi %s2344_s16, %s2439_s16   ;;  %s1946_s13 = sphi %s2438_s13, %s1250_s13   ;;  %s1942_s30 = sphi %s2437_s30, %s1251_s30  }
 0x2de   : >> { %1214 = vst [vmem:[%s1942_s30] sm:$0xff] %v1213_v8  ;;  %1216 = vst [vmem:[%s1942_s30 + $0x8] sm:$0xff] %v1215_v9  ;;  %v1219_v11 = vld [vmem:[%s1946_s13 + $0x18] sm:$0xff]  ;;  %v1221_v12 = vld [vmem:[%s1946_s13 + $0x20] sm:$0xff]  ;;  %p1246_p5 = scmp.ge.s32.totalorder %s1245_s24, %s2335_s18  ;;  %p1206_p6 = scmp.ge.s32.totalorder %s1207_s21, %s2335_s18 }
 0x2df   : >> { %1218 = vst [vmem:[%s1942_s30 + $0x10] sm:$0xff] %v1217_v10  ;;  %v1223_v13 = vld [vmem:[%s1946_s13 + $0x28] sm:$0xff]  ;;  %1220 = vst [vmem:[%s1942_s30 + $0x18] sm:$0xff] %v1219_v11  ;;  %v1225_v14 = vld [vmem:[%s1946_s13 + $0x30] sm:$0xff] }
 0x2e0   : >> { %1222 = vst [vmem:[%s1942_s30 + $0x20] sm:$0xff] %v1221_v12  ;;  %1224 = vst [vmem:[%s1942_s30 + $0x28] sm:$0xff] %v1223_v13  ;;  %v1227_v15 = vld [vmem:[%s1946_s13 + $0x38] sm:$0xff]  ;;  %v1229_v16 = vld [vmem:[%s1946_s13 + $0x40] sm:$0xff]  ;;  %s2452_s24 = smov (%p1246_p5, %s1245_s24), 0 }
 0x2e1   : >> { %1226 = vst [vmem:[%s1942_s30 + $0x30] sm:$0xff] %v1225_v14  ;;  %1228 = vst [vmem:[%s1942_s30 + $0x38] sm:$0xff] %v1227_v15  ;;  %v1231_v17 = vld [vmem:[%s1946_s13 + $0x48] sm:$0xff]  ;;  %v1233_v18 = vld [vmem:[%s1946_s13 + $0x50] sm:$0xff]  ;;  %s1524_s25 = sshll.u32 %s2452_s24, 7  ;;  %s2439_s16 = smov %s2452_s24 }
 0x2e2   : >> { %1230 = vst [vmem:[%s1942_s30 + $0x40] sm:$0xff] %v1229_v16  ;;  %v1235_v19 = vld [vmem:[%s1946_s13 + $0x58] sm:$0xff]  ;;  %1232 = vst [vmem:[%s1942_s30 + $0x48] sm:$0xff] %v1231_v17  ;;  %v1237_v20 = vld [vmem:[%s1946_s13 + $0x60] sm:$0xff]  ;;  %1209 = sbr.rel (!%p1206_p6) target bundleno = 733 (0x2dd), region = 232 }
 0x2e3   : >> { %1234 = vst [vmem:[%s1942_s30 + $0x50] sm:$0xff] %v1233_v18  ;;  %1236 = vst [vmem:[%s1942_s30 + $0x58] sm:$0xff] %v1235_v19  ;;  %v1239_v21 = vld [vmem:[%s1946_s13 + $0x68] sm:$0xff]  ;;  %v1241_v22 = vld [vmem:[%s1946_s13 + $0x70] sm:$0xff] }
 0x2e4   : >> { %1238 = vst [vmem:[%s1942_s30 + $0x60] sm:$0xff] %v1237_v20  ;;  %1240 = vst [vmem:[%s1942_s30 + $0x68] sm:$0xff] %v1239_v21  ;;  %v1243_v23 = vld [vmem:[%s1946_s13 + $0x78] sm:$0xff]  ;;  %s1250_s13 = scalar_lea.vmem %s2198_s22, %s1524_s25 [#allocation3]  }
 0x2e5   : >> { %1242 = vst [vmem:[%s1942_s30 + $0x70] sm:$0xff] %v1241_v22  ;;  %1244 = vst [vmem:[%s1942_s30 + $0x78] sm:$0xff] %v1243_v23  ;;  %s1251_s30 = scalar_lea.vmem %s2329_s15, %s1524_s25  }
 0x2e7 PF: > { %s2404_s26 = sand.u32 15, %s2450_s0   ;;  %s1538_s10 = sshll.u32 %s2335_s18, 7 }
 0x2e8   : > { %s1256_s27 = scalar_lea.vmem %s2198_s22, %s1538_s10 [#allocation3]   ;;  %s1258_s19 = scalar_lea.vmem %s2329_s15, %s1538_s10  }
 0x2e9   : > { %p1529_p7 = scmp.le.s32.totalorder %s2404_s26, 0 }
 0x2ea   : > { %s1956_s23 = smov (!%p1529_p7), %s1258_s19   ;;  %s1960_s20 = smov (!%p1529_p7), %s1256_s27  }
 0x2eb   : > { %1416 = sbr.rel (%p1529_p7) target bundleno = 760 (0x2f8), region = 237  ;;  %s1964_s29 = smov (!%p1529_p7), 0  }
 0x2ec   : > { %s1968_s11 = smov (!%p1529_p7), 0  }
 0x2f0 LB: >> { %v1268_v24 = vld [vmem:[%s1962_s20] sm:$0xff]  ;;  %s1270_s0 = sadd.s32 1, %s1966_s29  ;;  %s1262_s11 = sadd.s32 1, %s1970_s11   ;;  %s1970_s11 = sphi %s1968_s11, %s1262_s11   ;;  %s1966_s29 = sphi %s1964_s29, %s1965_s29   ;;  %s1962_s20 = sphi %s1960_s20, %s1275_s20   ;;  %s1958_s23 = sphi %s1956_s23, %s1276_s23  }
 0x2f1   : >> { %1269 = vst [vmem:[%s1958_s23] sm:$0xff] %v1268_v24  ;;  %p1271_p8 = scmp.ge.s32.totalorder %s1270_s0, %s2404_s26  ;;  %p1261_p9 = scmp.ge.s32.totalorder %s1262_s11, %s2404_s26 }
 0x2f3   : >> { %s2454_s0 = smov (%p1271_p8, %s1270_s0), 0  ;;  %1264 = sbr.rel (!%p1261_p9) target bundleno = 752 (0x2f0), region = 243 }
 0x2f4   : >> { %s1530_s22 = sshll.u32 %s2454_s0, 3  ;;  %s1965_s29 = smov %s2454_s0  }
 0x2f5   : >> { %s1275_s20 = scalar_lea.vmem %s1256_s27, %s1530_s22 [#allocation3]   ;;  %s1276_s23 = scalar_lea.vmem %s1258_s19, %s1530_s22  }
 0x2f8 PF: > { %p16_p10 = scmp.ge.s32.totalorder %s2032_s9, 4   ;;  %s2440_s27 = smov %s1902_s28 }
 0x2f9   : > { %s2441_s28 = smov %s2040_s12  ;;  %s2442_s29 = smov %s2032_s9 }
 0x2fa   :  { %18 = sbr.rel (!%p16_p10) target bundleno = 4 (0x4), region = 254 }

</bundles_post_ra>
